<compile_context>
chip_gen: v7x
topology: tpu7x:2x2x1
jax: 0.10.0
libtpu: 0.0.40
codegen_flags: <defaults>
</compile_context>

<pallas_src>
import jax
import jax.numpy as jnp
from jax.experimental import pallas as pl
from jax.experimental.pallas import tpu as pltpu

_IN = 28 * 28     # 784
_H1 = 400
_H2 = 200
_OUT = 10
_TM_MAX = 1024    # batch-tile cap


def _mlp_kernel(x_ref, w1_ref, b1_ref, w2_ref, b2_ref, w3_ref, b3_ref, o_ref):
    x = x_ref[...]
    if x.dtype != jnp.bfloat16:        # static (trace-time) check; no-op for bf16 callers
        x = x.astype(jnp.bfloat16)
    # MXU in bf16 with f32 accumulation; bias + ReLU in f32, then re-cast.
    h1 = jnp.dot(x, w1_ref[...], preferred_element_type=jnp.float32)
    h1 = jnp.maximum(h1 + b1_ref[...], 0.0).astype(jnp.bfloat16)
    h2 = jnp.dot(h1, w2_ref[...], preferred_element_type=jnp.float32)
    h2 = jnp.maximum(h2 + b2_ref[...], 0.0).astype(jnp.bfloat16)
    out = jnp.dot(h2, w3_ref[...], preferred_element_type=jnp.float32)
    o_ref[...] = out + b3_ref[...]


def prepare_params(params):
    """One-time weight prep: transpose to (in, out), cast to bf16 (true widths).

    `params` uses the PyTorch convention:
        w1 (400, 784), b1 (400,), w2 (200, 400), b2 (200,), w3 (10, 200), b3 (10,)
    """
    def prep_w(w):
        return jnp.asarray(w, jnp.float32).T.astype(jnp.bfloat16)   # (in, out)

    def prep_b(b):
        return jnp.asarray(b, jnp.float32).reshape(1, -1)            # f32 bias row

    return {
        "w1": prep_w(params["w1"]), "b1": prep_b(params["b1"]),
        "w2": prep_w(params["w2"]), "b2": prep_b(params["b2"]),
        "w3": prep_w(params["w3"]), "b3": prep_b(params["b3"]),
    }


def _round_up(v, m):
    return ((v + m - 1) // m) * m


@jax.jit
def fully_connected_net(x, prepared):
    """Forward pass. x: (N, 1, 28, 28) or (N, 784), any float dtype (bf16 preferred).

    Returns (N, 10) f32 logits.
    """
    n = x.shape[0]
    x2d = x.reshape(n, _IN)            # metadata-only reshape: no extra HBM pass

    # Batch tile: sublane-aligned; for batches > 128 aim for >= 4 grid steps so
    # both v7x TensorCores get work under the "parallel" axis; cap for VMEM.
    n_al = _round_up(max(n, 1), 8)
    if n_al <= 128:
        tm = n_al
    else:
        tm = min(_TM_MAX, max(128, _round_up(-(-n_al // 4), 8)))
    grid = (pl.cdiv(n, tm),)           # last block may be partial; rows are independent
                                       # and out-of-range output rows are never written.

    w1, b1 = prepared["w1"], prepared["b1"]
    w2, b2 = prepared["w2"], prepared["b2"]
    w3, b3 = prepared["w3"], prepared["b3"]

    flops = 2 * n * (_IN * _H1 + _H1 * _H2 + _H2 * _OUT)
    bytes_accessed = (
        x2d.size * x2d.dtype.itemsize + n * _OUT * 4
        + (w1.size + w2.size + w3.size) * 2
        + (b1.size + b2.size + b3.size) * 4)

    def resident(shape):
        # Constant index map, never re-fetched -> single buffer is enough.
        return pl.BlockSpec(shape, lambda i: (0, 0), pipeline_mode=pl.Buffered(1))

    out = pl.pallas_call(
        _mlp_kernel,
        out_shape=jax.ShapeDtypeStruct((n, _OUT), jnp.float32),
        grid=grid,
        in_specs=[
            pl.BlockSpec((tm, _IN), lambda i: (i, 0)),   # x tile (software-pipelined)
            resident((_IN, _H1)), resident((1, _H1)),    # weights/biases stay in VMEM
            resident((_H1, _H2)), resident((1, _H2)),
            resident((_H2, _OUT)), resident((1, _OUT)),
        ],
        out_specs=pl.BlockSpec((tm, _OUT), lambda i: (i, 0)),   # 10-wide, no zero writeback
        compiler_params=pltpu.CompilerParams(
            dimension_semantics=("parallel",),
            vmem_limit_bytes=32 * 1024 * 1024),
        cost_estimate=pl.CostEstimate(
            flops=flops, transcendentals=0, bytes_accessed=bytes_accessed),
    )(x2d, w1, b1, w2, b2, w3, b3)

    return out


def init_params(key):
    """Deterministic init mimicking nn.Linear default (uniform +/- 1/sqrt(fan_in))."""
    sizes = [(400, 784), (200, 400), (10, 200)]
    params = {}
    keys = jax.random.split(key, 2 * len(sizes))
    for i, (out_f, in_f) in enumerate(sizes):
        bound = 1.0 / (in_f ** 0.5)
        params[f"w{i+1}"] = jax.random.uniform(
            keys[2 * i], (out_f, in_f), jnp.float32, -bound, bound)
        params[f"b{i+1}"] = jax.random.uniform(
            keys[2 * i + 1], (out_f,), jnp.float32, -bound, bound)
    return params


def _reference(x, params):
    n = x.shape[0]
    h = x.reshape(n, 28 * 28).astype(jnp.float32)
    h = jnp.maximum(h @ params["w1"].T + params["b1"], 0.0)
    h = jnp.maximum(h @ params["w2"].T + params["b2"], 0.0)
    return h @ params["w3"].T + params["b3"]


if __name__ == "__main__":
    key = jax.random.PRNGKey(0)
    pkey, xkey = jax.random.split(key)
    params = init_params(pkey)
    prepared = prepare_params(params)   # one-time weight prep (transpose / bf16)

    # Small MNIST-like batch: (N, C, H, W) = (8, 1, 28, 28). The caller stores
    # the batch in bf16, halving the dominant x HBM stream into the kernel.
    x = jax.random.normal(xkey, (8, 1, 28, 28), jnp.float32).astype(jnp.bfloat16)

    out = jax.block_until_ready(fully_connected_net(x, prepared))

    ref = _reference(x, params)
    assert out.shape == (8, 10)
    assert out.dtype == jnp.float32
    # bf16 weights / inter-layer activations with f32 accumulation -> loosened
    # tolerance vs the f32 reference.
    assert jnp.allclose(out, ref, atol=2e-2, rtol=2e-2), (
        float(jnp.max(jnp.abs(out - ref))))

    print("KERNEL_OK")
</pallas_src>

<mosaic_0001>
module attributes {stable_mosaic.version = 11 : i64} {
  func.func @_mlp_kernel(%arg0: i32, %arg1: memref<8x784xbf16, #tpu.memory_space<vmem>>, %arg2: memref<784x400xbf16, #tpu.memory_space<vmem>>, %arg3: memref<1x400xf32, #tpu.memory_space<vmem>>, %arg4: memref<400x200xbf16, #tpu.memory_space<vmem>>, %arg5: memref<1x200xf32, #tpu.memory_space<vmem>>, %arg6: memref<200x10xbf16, #tpu.memory_space<vmem>>, %arg7: memref<1x10xf32, #tpu.memory_space<vmem>>, %arg8: memref<8x10xf32, #tpu.memory_space<vmem>>) attributes {dimension_semantics = [#tpu.dimension_semantics<parallel>], iteration_bounds = array<i64: 1>, scalar_prefetch = 0 : i64, scratch_operands = 0 : i64, tpu.core_type = #tpu.core_type<tc>, window_params = [{transform_indices = @transform_0, window_bounds = array<i64: 8, 784>}, {pipeline_mode = #tpu.pipeline_mode<synchronous>, transform_indices = @transform_1, window_bounds = array<i64: 784, 400>}, {pipeline_mode = #tpu.pipeline_mode<synchronous>, transform_indices = @transform_2, window_bounds = array<i64: 1, 400>}, {pipeline_mode = #tpu.pipeline_mode<synchronous>, transform_indices = @transform_3, window_bounds = array<i64: 400, 200>}, {pipeline_mode = #tpu.pipeline_mode<synchronous>, transform_indices = @transform_4, window_bounds = array<i64: 1, 200>}, {pipeline_mode = #tpu.pipeline_mode<synchronous>, transform_indices = @transform_5, window_bounds = array<i64: 200, 10>}, {pipeline_mode = #tpu.pipeline_mode<synchronous>, transform_indices = @transform_6, window_bounds = array<i64: 1, 10>}, {transform_indices = @transform_7, window_bounds = array<i64: 8, 10>}]} {
    %c0 = arith.constant 0 : index
    %c0_0 = arith.constant 0 : index
    %0 = vector.load %arg1[%c0, %c0_0] : memref<8x784xbf16, #tpu.memory_space<vmem>>, vector<8x784xbf16>
    %c0_1 = arith.constant 0 : index
    %c0_2 = arith.constant 0 : index
    %1 = vector.load %arg2[%c0_1, %c0_2] : memref<784x400xbf16, #tpu.memory_space<vmem>>, vector<784x400xbf16>
    %cst = arith.constant dense<0.000000e+00> : vector<8x400xf32>
    %2 = tpu.matmul %0, %1, %cst {dimension_numbers = #tpu.dot_dimension_numbers<[1], [0], [0], [1], [0, 0, 1, 1], [], []>} : vector<8x784xbf16>, vector<784x400xbf16>, vector<8x400xf32> -> vector<8x400xf32>
    %c0_3 = arith.constant 0 : index
    %c0_4 = arith.constant 0 : index
    %3 = vector.load %arg3[%c0_3, %c0_4] : memref<1x400xf32, #tpu.memory_space<vmem>>, vector<1x400xf32>
    %4 = vector.broadcast %3 : vector<1x400xf32> to vector<8x400xf32>
    %5 = arith.addf %2, %4 : vector<8x400xf32>
    %cst_5 = arith.constant 0.000000e+00 : f32
    %6 = vector.broadcast %cst_5 : f32 to vector<8x400xf32>
    %7 = arith.maximumf %5, %6 : vector<8x400xf32>
    %8 = arith.truncf %7 : vector<8x400xf32> to vector<8x400xbf16>
    %c0_6 = arith.constant 0 : index
    %c0_7 = arith.constant 0 : index
    %9 = vector.load %arg4[%c0_6, %c0_7] : memref<400x200xbf16, #tpu.memory_space<vmem>>, vector<400x200xbf16>
    %cst_8 = arith.constant dense<0.000000e+00> : vector<8x200xf32>
    %10 = tpu.matmul %8, %9, %cst_8 {dimension_numbers = #tpu.dot_dimension_numbers<[1], [0], [0], [1], [0, 0, 1, 1], [], []>} : vector<8x400xbf16>, vector<400x200xbf16>, vector<8x200xf32> -> vector<8x200xf32>
    %c0_9 = arith.constant 0 : index
    %c0_10 = arith.constant 0 : index
    %11 = vector.load %arg5[%c0_9, %c0_10] : memref<1x200xf32, #tpu.memory_space<vmem>>, vector<1x200xf32>
    %12 = vector.broadcast %11 : vector<1x200xf32> to vector<8x200xf32>
    %13 = arith.addf %10, %12 : vector<8x200xf32>
    %cst_11 = arith.constant 0.000000e+00 : f32
    %14 = vector.broadcast %cst_11 : f32 to vector<8x200xf32>
    %15 = arith.maximumf %13, %14 : vector<8x200xf32>
    %16 = arith.truncf %15 : vector<8x200xf32> to vector<8x200xbf16>
    %c0_12 = arith.constant 0 : index
    %c0_13 = arith.constant 0 : index
    %17 = vector.load %arg6[%c0_12, %c0_13] : memref<200x10xbf16, #tpu.memory_space<vmem>>, vector<200x10xbf16>
    %cst_14 = arith.constant dense<0.000000e+00> : vector<8x10xf32>
    %18 = tpu.matmul %16, %17, %cst_14 {dimension_numbers = #tpu.dot_dimension_numbers<[1], [0], [0], [1], [0, 0, 1, 1], [], []>} : vector<8x200xbf16>, vector<200x10xbf16>, vector<8x10xf32> -> vector<8x10xf32>
    %c0_15 = arith.constant 0 : index
    %c0_16 = arith.constant 0 : index
    %19 = vector.load %arg7[%c0_15, %c0_16] : memref<1x10xf32, #tpu.memory_space<vmem>>, vector<1x10xf32>
    %20 = vector.broadcast %19 : vector<1x10xf32> to vector<8x10xf32>
    %21 = arith.addf %18, %20 : vector<8x10xf32>
    %c0_17 = arith.constant 0 : index
    %c0_18 = arith.constant 0 : index
    %22 = vector.load %arg8[%c0_17, %c0_18] : memref<8x10xf32, #tpu.memory_space<vmem>>, vector<8x10xf32>
    tpu.vector_store %arg8[%c0_17, %c0_18], %21 {strides = array<i32>} : memref<8x10xf32, #tpu.memory_space<vmem>>, vector<8x10xf32>,
    return
  }
  func.func @transform_0(%arg0: i32) -> (i32, i32) {
    %c0_i32 = arith.constant 0 : i32
    %c0_i32_0 = arith.constant 0 : i32
    return %arg0, %c0_i32 : i32, i32
  }
  func.func @transform_1(%arg0: i32) -> (i32, i32) {
    %c0_i32 = arith.constant 0 : i32
    %c0_i32_0 = arith.constant 0 : i32
    %c0_i32_1 = arith.constant 0 : i32
    return %c0_i32, %c0_i32_0 : i32, i32
  }
  func.func @transform_2(%arg0: i32) -> (i32, i32) {
    %c0_i32 = arith.constant 0 : i32
    %c0_i32_0 = arith.constant 0 : i32
    %c0_i32_1 = arith.constant 0 : i32
    return %c0_i32, %c0_i32_0 : i32, i32
  }
  func.func @transform_3(%arg0: i32) -> (i32, i32) {
    %c0_i32 = arith.constant 0 : i32
    %c0_i32_0 = arith.constant 0 : i32
    %c0_i32_1 = arith.constant 0 : i32
    return %c0_i32, %c0_i32_0 : i32, i32
  }
  func.func @transform_4(%arg0: i32) -> (i32, i32) {
    %c0_i32 = arith.constant 0 : i32
    %c0_i32_0 = arith.constant 0 : i32
    %c0_i32_1 = arith.constant 0 : i32
    return %c0_i32, %c0_i32_0 : i32, i32
  }
  func.func @transform_5(%arg0: i32) -> (i32, i32) {
    %c0_i32 = arith.constant 0 : i32
    %c0_i32_0 = arith.constant 0 : i32
    %c0_i32_1 = arith.constant 0 : i32
    return %c0_i32, %c0_i32_0 : i32, i32
  }
  func.func @transform_6(%arg0: i32) -> (i32, i32) {
    %c0_i32 = arith.constant 0 : i32
    %c0_i32_0 = arith.constant 0 : i32
    %c0_i32_1 = arith.constant 0 : i32
    return %c0_i32, %c0_i32_0 : i32, i32
  }
  func.func @transform_7(%arg0: i32) -> (i32, i32) {
    %c0_i32 = arith.constant 0 : i32
    %c0_i32_0 = arith.constant 0 : i32
    return %arg0, %c0_i32 : i32, i32
  }
}

</mosaic_0001>

<bundles_post_ra>
// kernel: fully_connected_net.1
= control target key start
LH: loop header
LB: loop body
LE: loop exit
PB: predicated region body
PF: predicated region fallthrough
CT: control target
= control target key end

     0   :  { %s3778_s0 = inlined_call_operand.vmem [shape: bf16[8,784], index: 0, kind: input, shape index: {}]   ;;  %s3779_s1 = inlined_call_operand.vmem [shape: bf16[784,400], index: 1, kind: input, shape index: {}]   ;;  %s3780_s2 = inlined_call_operand.vmem [shape: f32[1,400], index: 2, kind: input, shape index: {}]   ;;  %s3781_s3 = inlined_call_operand.vmem [shape: bf16[400,200], index: 3, kind: input, shape index: {}]   ;;  %s3782_s4 = inlined_call_operand.vmem [shape: f32[1,200], index: 4, kind: input, shape index: {}]   ;;  %s3783_s5 = inlined_call_operand.vmem [shape: bf16[200,10], index: 5, kind: input, shape index: {}]   ;;  %s3784_s6 = inlined_call_operand.vmem [shape: f32[1,10], index: 6, kind: input, shape index: {}]   ;;  %s3785_s7 = inlined_call_operand.hbm [shape: f32[8,10], index: 7, kind: output, shape index: {}]  }
   0x1   :  { %v2469_v0 = vld [vmem:[%s3779_s1 + $0x4] ss:$16 sps:$4 sm:$0xff]   ;;  %v2471_v1 = vld [vmem:[%s3779_s1 + $0xc] ss:$16 sps:$4 sm:$0xff]   ;;  %v2473_v2 = vld [vmem:[%s3779_s1] ss:$16 sps:$4 sm:$0xff]  }
   0x2   :  { %1258 = vmatprep.subr.bf16.mxu0 %v2469_v0  ;;  %v2474_v3 = vld [vmem:[%s3779_s1 + $0x8] ss:$16 sps:$4 sm:$0xff]   ;;  %1422 = vmatprep.subr.bf16.mxu1 %v2471_v1  ;;  %v2475_v4 = vld [vmem:[%s3779_s1 + $0x24] ss:$16 sps:$4 sm:$0xff]   ;;  %v2477_v5 = vld [vmem:[%s3779_s1 + $0x2c] ss:$16 sps:$4 sm:$0xff]  }
   0x3   :  { %1259 = vmatpush1.bf16.msra.mxu0 %v2473_v2  ;;  %1423 = vmatpush1.bf16.msra.mxu1 %v2474_v3  ;;  %v2479_v6 = vld [vmem:[%s3779_s1 + $0x20] ss:$16 sps:$4 sm:$0xff]   ;;  %v2480_v7 = vld [vmem:[%s3779_s1 + $0x28] ss:$16 sps:$4 sm:$0xff]   ;;  %v2481_v8 = vld [vmem:[%s3779_s1 + $0x44] ss:$16 sps:$4 sm:$0xff]  }
   0x4   :  { %1260 = vmatprep.subr.bf16.mxu0 %v2475_v4  ;;  %1424 = vmatprep.subr.bf16.mxu1 %v2477_v5  ;;  %v2483_v9 = vld [vmem:[%s3779_s1 + $0x4c] ss:$16 sps:$4 sm:$0xff]   ;;  %v2485_v10 = vld [vmem:[%s3779_s1 + $0x40] ss:$16 sps:$4 sm:$0xff]   ;;  %v2486_v11 = vld [vmem:[%s3779_s1 + $0x48] ss:$16 sps:$4 sm:$0xff]  }
   0x5   :  { %v2487_v12 = vld [vmem:[%s3779_s1 + $0x64] ss:$16 sps:$4 sm:$0xff]   ;;  %v2489_v13 = vld [vmem:[%s3779_s1 + $0x6c] ss:$16 sps:$4 sm:$0xff]   ;;  %v2491_v14 = vld [vmem:[%s3779_s1 + $0x60] ss:$16 sps:$4 sm:$0xff]  }
   0x6   :  { %v2492_v15 = vld [vmem:[%s3779_s1 + $0x68] ss:$16 sps:$4 sm:$0xff]   ;;  %v2493_v16 = vld [vmem:[%s3779_s1 + $0x84] ss:$16 sps:$4 sm:$0xff]   ;;  %v2495_v17 = vld [vmem:[%s3779_s1 + $0x8c] ss:$16 sps:$4 sm:$0xff]  }
   0x7   :  { %1261 = vmatpush1.bf16.msra.mxu0 %v2479_v6  ;;  %1425 = vmatpush1.bf16.msra.mxu1 %v2480_v7  ;;  %v2497_v18 = vld [vmem:[%s3779_s1 + $0x80] ss:$16 sps:$4 sm:$0xff]   ;;  %v2498_v19 = vld [vmem:[%s3779_s1 + $0x88] ss:$16 sps:$4 sm:$0xff]   ;;  %v2499_v20 = vld [vmem:[%s3779_s1 + $0xa4] ss:$16 sps:$4 sm:$0xff]  }
   0x8   :  { %1262 = vmatprep.subr.bf16.mxu0 %v2481_v8  ;;  %1426 = vmatprep.subr.bf16.mxu1 %v2483_v9  ;;  %v2501_v21 = vld [vmem:[%s3779_s1 + $0xac] ss:$16 sps:$4 sm:$0xff]   ;;  %v2503_v22 = vld [vmem:[%s3779_s1 + $0xa0] ss:$16 sps:$4 sm:$0xff]   ;;  %v2504_v23 = vld [vmem:[%s3779_s1 + $0xa8] ss:$16 sps:$4 sm:$0xff]  }
   0x9   :  { %v2505_v24 = vld [vmem:[%s3779_s1 + $0xc4] ss:$16 sps:$4 sm:$0xff]   ;;  %v2507_v25 = vld [vmem:[%s3779_s1 + $0xcc] ss:$16 sps:$4 sm:$0xff]   ;;  %v2509_v26 = vld [vmem:[%s3779_s1 + $0xc0] ss:$16 sps:$4 sm:$0xff]  }
   0xa   :  { %v2510_v27 = vld [vmem:[%s3779_s1 + $0xc8] ss:$16 sps:$4 sm:$0xff]   ;;  %v2511_v28 = vld [vmem:[%s3779_s1 + $0xe4] ss:$16 sps:$4 sm:$0xff]   ;;  %v2513_v29 = vld [vmem:[%s3779_s1 + $0xec] ss:$16 sps:$4 sm:$0xff]  }
   0xb   :  { %1263 = vmatpush1.bf16.msra.mxu0 %v2485_v10  ;;  %1427 = vmatpush1.bf16.msra.mxu1 %v2486_v11  ;;  %v2515_v30 = vld [vmem:[%s3779_s1 + $0xe0] ss:$16 sps:$4 sm:$0xff]   ;;  %v2516_v31 = vld [vmem:[%s3779_s1 + $0xe8] ss:$16 sps:$4 sm:$0xff]   ;;  %v2517_v32 = vld [vmem:[%s3779_s1 + $0x104] ss:$16 sps:$4 sm:$0xff]  }
   0xc   :  { %1264 = vmatprep.subr.bf16.mxu0 %v2487_v12  ;;  %1428 = vmatprep.subr.bf16.mxu1 %v2489_v13  ;;  %v2519_v33 = vld [vmem:[%s3779_s1 + $0x10c] ss:$16 sps:$4 sm:$0xff]   ;;  %v2521_v34 = vld [vmem:[%s3779_s1 + $0x100] ss:$16 sps:$4 sm:$0xff]   ;;  %v2522_v35 = vld [vmem:[%s3779_s1 + $0x108] ss:$16 sps:$4 sm:$0xff]  }
   0xd   :  { %v2523_v36 = vld [vmem:[%s3779_s1 + $0x124] ss:$16 sps:$4 sm:$0xff]   ;;  %v2525_v37 = vld [vmem:[%s3779_s1 + $0x12c] ss:$16 sps:$4 sm:$0xff]   ;;  %v2527_v38 = vld [vmem:[%s3779_s1 + $0x120] ss:$16 sps:$4 sm:$0xff]  }
   0xe   :  { %v2528_v39 = vld [vmem:[%s3779_s1 + $0x128] ss:$16 sps:$4 sm:$0xff]   ;;  %v2529_v40 = vld [vmem:[%s3779_s1 + $0x144] ss:$16 sps:$4 sm:$0xff]   ;;  %v2531_v41 = vld [vmem:[%s3779_s1 + $0x14c] ss:$16 sps:$4 sm:$0xff]  }
   0xf   :  { %1265 = vmatpush1.bf16.msra.mxu0 %v2491_v14  ;;  %1429 = vmatpush1.bf16.msra.mxu1 %v2492_v15  ;;  %v2533_v42 = vld [vmem:[%s3779_s1 + $0x140] ss:$16 sps:$4 sm:$0xff]   ;;  %v2534_v43 = vld [vmem:[%s3779_s1 + $0x148] ss:$16 sps:$4 sm:$0xff]   ;;  %v2535_v44 = vld [vmem:[%s3779_s1 + $0x164] ss:$16 sps:$4 sm:$0xff]  }
  0x10   :  { %1266 = vmatprep.subr.bf16.mxu0 %v2493_v16  ;;  %1430 = vmatprep.subr.bf16.mxu1 %v2495_v17  ;;  %v2537_v45 = vld [vmem:[%s3779_s1 + $0x16c] ss:$16 sps:$4 sm:$0xff]   ;;  %v28_v46 = vld [vmem:[%s3778_s0] sm:$0xff]  ;;  %v2540_v49 = vld [vmem:[%s3779_s1 + $0x168] ss:$16 sps:$4 sm:$0xff]  }
  0x11   :  { %v2539_v47 = vld [vmem:[%s3779_s1 + $0x160] ss:$16 sps:$4 sm:$0xff]   ;;  %v2167_v48 = vcombine.high %v28_v46, %v28_v46  ;;  %v2541_v50 = vld [vmem:[%s3779_s1 + $0x184] ss:$16 sps:$4 sm:$0xff]   ;;  %v2543_v51 = vld [vmem:[%s3779_s1 + $0x18c] ss:$16 sps:$4 sm:$0xff]   ;;  %v2166_v4 = vcombine.low %v28_v46, %v28_v46 }
  0x12   :  { %v2545_v52 = vld [vmem:[%s3779_s1 + $0x180] ss:$16 sps:$4 sm:$0xff]   ;;  %v2546_v53 = vld [vmem:[%s3779_s1 + $0x188] ss:$16 sps:$4 sm:$0xff]   ;;  %v2547_v54 = vld [vmem:[%s3779_s1 + $0x1a4] ss:$16 sps:$4 sm:$0xff]  }
  0x13   :  { %1267 = vmatpush1.bf16.msra.mxu0 %v2497_v18  ;;  %1431 = vmatpush1.bf16.msra.mxu1 %v2498_v19  ;;  %v2549_v55 = vld [vmem:[%s3779_s1 + $0x1ac] ss:$16 sps:$4 sm:$0xff]   ;;  %v2551_v56 = vld [vmem:[%s3779_s1 + $0x1a0] ss:$16 sps:$4 sm:$0xff]   ;;  %v2552_v57 = vld [vmem:[%s3779_s1 + $0x1a8] ss:$16 sps:$4 sm:$0xff]  }
  0x14   :  { %1268 = vmatprep.subr.bf16.mxu0 %v2499_v20  ;;  %1432 = vmatprep.subr.bf16.mxu1 %v2501_v21  ;;  %v2553_v58 = vld [vmem:[%s3779_s1 + $0x1c4] ss:$16 sps:$4 sm:$0xff]   ;;  %v2555_v59 = vld [vmem:[%s3779_s1 + $0x1cc] ss:$16 sps:$4 sm:$0xff]   ;;  %v2557_v60 = vld [vmem:[%s3779_s1 + $0x1c0] ss:$16 sps:$4 sm:$0xff]  }
  0x15   :  { %1290 = vmatprep.mubr.bf16.mxu0 %v2167_v48  ;;  %1454 = vmatprep.mubr.bf16.mxu1 %v2167_v48  ;;  %v2558_v61 = vld [vmem:[%s3779_s1 + $0x1c8] ss:$16 sps:$4 sm:$0xff]   ;;  %v2559_v62 = vld [vmem:[%s3779_s1 + $0x1e4] ss:$16 sps:$4 sm:$0xff]   ;;  %v2561_v63 = vld [vmem:[%s3779_s1 + $0x1ec] ss:$16 sps:$4 sm:$0xff]  }
  0x16   :  { %v2563_v0 = vld [vmem:[%s3779_s1 + $0x1e0] ss:$16 sps:$4 sm:$0xff]   ;;  %v2564_v1 = vld [vmem:[%s3779_s1 + $0x1e8] ss:$16 sps:$4 sm:$0xff]   ;;  %v2569_v2 = vld [vmem:[%s3779_s1 + $0x204] ss:$16 sps:$4 sm:$0xff]  }
  0x17   :  { %1269 = vmatpush1.bf16.msra.mxu0 %v2503_v22  ;;  %1433 = vmatpush1.bf16.msra.mxu1 %v2504_v23  ;;  %v2572_v3 = vld [vmem:[%s3779_s1 + $0x20c] ss:$16 sps:$4 sm:$0xff]   ;;  %v2567_v5 = vld [vmem:[%s3779_s1 + $0x200] ss:$16 sps:$4 sm:$0xff]   ;;  %v2570_v6 = vld [vmem:[%s3779_s1 + $0x208] ss:$16 sps:$4 sm:$0xff]  }
  0x18   :  { %1270 = vmatprep.subr.bf16.mxu0 %v2505_v24  ;;  %1434 = vmatprep.subr.bf16.mxu1 %v2507_v25  ;;  %v2575_v7 = vld [vmem:[%s3779_s1 + $0x224] ss:$16 sps:$4 sm:$0xff]   ;;  %v2578_v8 = vld [vmem:[%s3779_s1 + $0x22c] ss:$16 sps:$4 sm:$0xff]   ;;  %v2573_v9 = vld [vmem:[%s3779_s1 + $0x220] ss:$16 sps:$4 sm:$0xff]  }
  0x19   :  { %v2576_v10 = vld [vmem:[%s3779_s1 + $0x228] ss:$16 sps:$4 sm:$0xff]   ;;  %v2581_v11 = vld [vmem:[%s3779_s1 + $0x244] ss:$16 sps:$4 sm:$0xff]   ;;  %v2584_v12 = vld [vmem:[%s3779_s1 + $0x24c] ss:$16 sps:$4 sm:$0xff]  }
  0x1a   :  { %v2579_v13 = vld [vmem:[%s3779_s1 + $0x240] ss:$16 sps:$4 sm:$0xff]   ;;  %v2582_v14 = vld [vmem:[%s3779_s1 + $0x248] ss:$16 sps:$4 sm:$0xff]   ;;  %v2587_v15 = vld [vmem:[%s3779_s1 + $0x264] ss:$16 sps:$4 sm:$0xff]  }
  0x1b   :  { %1271 = vmatpush1.bf16.msra.mxu0 %v2509_v26  ;;  %1435 = vmatpush1.bf16.msra.mxu1 %v2510_v27  ;;  %v2590_v16 = vld [vmem:[%s3779_s1 + $0x26c] ss:$16 sps:$4 sm:$0xff]   ;;  %v2585_v17 = vld [vmem:[%s3779_s1 + $0x260] ss:$16 sps:$4 sm:$0xff]   ;;  %v2588_v18 = vld [vmem:[%s3779_s1 + $0x268] ss:$16 sps:$4 sm:$0xff]  }
  0x1c   :  { %1272 = vmatprep.subr.bf16.mxu0 %v2511_v28  ;;  %1436 = vmatprep.subr.bf16.mxu1 %v2513_v29  ;;  %v2593_v19 = vld [vmem:[%s3779_s1 + $0x284] ss:$16 sps:$4 sm:$0xff]   ;;  %v2596_v20 = vld [vmem:[%s3779_s1 + $0x28c] ss:$16 sps:$4 sm:$0xff]   ;;  %v2591_v21 = vld [vmem:[%s3779_s1 + $0x280] ss:$16 sps:$4 sm:$0xff]  }
  0x1d   :  { %v2594_v22 = vld [vmem:[%s3779_s1 + $0x288] ss:$16 sps:$4 sm:$0xff]   ;;  %v2599_v23 = vld [vmem:[%s3779_s1 + $0x2a4] ss:$16 sps:$4 sm:$0xff]   ;;  %v2602_v24 = vld [vmem:[%s3779_s1 + $0x2ac] ss:$16 sps:$4 sm:$0xff]  }
  0x1e   :  { %v2597_v25 = vld [vmem:[%s3779_s1 + $0x2a0] ss:$16 sps:$4 sm:$0xff]   ;;  %v2600_v26 = vld [vmem:[%s3779_s1 + $0x2a8] ss:$16 sps:$4 sm:$0xff]   ;;  %v2605_v27 = vld [vmem:[%s3779_s1 + $0x2c4] ss:$16 sps:$4 sm:$0xff]  }
  0x1f   :  { %1273 = vmatpush1.bf16.msra.mxu0 %v2515_v30  ;;  %1437 = vmatpush1.bf16.msra.mxu1 %v2516_v31  ;;  %v2608_v28 = vld [vmem:[%s3779_s1 + $0x2cc] ss:$16 sps:$4 sm:$0xff]   ;;  %v2603_v31 = vld [vmem:[%s3779_s1 + $0x2c0] ss:$16 sps:$4 sm:$0xff]   ;;  %v2630_v48 = vld [vmem:[%s3779_s1 + $0x348] ss:$16 sps:$4 sm:$0xff]  }
  0x20   :  { %1274 = vmatprep.subr.bf16.mxu0 %v2517_v32  ;;  %1438 = vmatprep.subr.bf16.mxu1 %v2519_v33  ;;  %v3200_v29 = vld [vmem:[%s3778_s0 + $0x8] sm:$0xff]  ;;  %v2611_v33 = vld [vmem:[%s3779_s1 + $0x2e4] ss:$16 sps:$4 sm:$0xff]  }
  0x21   :  { %v2169_v30 = vcombine.high %v3200_v29, %v3200_v29  ;;  %v2606_v32 = vld [vmem:[%s3779_s1 + $0x2c8] ss:$16 sps:$4 sm:$0xff]   ;;  %v2632_v46 = vld [vmem:[%s3779_s1 + $0x34c] ss:$16 sps:$4 sm:$0xff]  }
  0x23   :  { %1275 = vmatpush1.bf16.msra.mxu0 %v2521_v34  ;;  %1439 = vmatpush1.bf16.msra.mxu1 %v2522_v35  ;;  %v2614_v34 = vld [vmem:[%s3779_s1 + $0x2ec] ss:$16 sps:$4 sm:$0xff]   ;;  %v2609_v35 = vld [vmem:[%s3779_s1 + $0x2e0] ss:$16 sps:$4 sm:$0xff]  }
  0x24   :  { %1276 = vmatprep.subr.bf16.mxu0 %v2523_v36  ;;  %1440 = vmatprep.subr.bf16.mxu1 %v2525_v37  ;;  %v2612_v36 = vld [vmem:[%s3779_s1 + $0x2e8] ss:$16 sps:$4 sm:$0xff]   ;;  %v2617_v37 = vld [vmem:[%s3779_s1 + $0x304] ss:$16 sps:$4 sm:$0xff]  }
  0x27   :  { %1277 = vmatpush1.bf16.msra.mxu0 %v2527_v38  ;;  %1441 = vmatpush1.bf16.msra.mxu1 %v2528_v39  ;;  %v2620_v38 = vld [vmem:[%s3779_s1 + $0x30c] ss:$16 sps:$4 sm:$0xff]   ;;  %v2615_v39 = vld [vmem:[%s3779_s1 + $0x300] ss:$16 sps:$4 sm:$0xff]  }
  0x28   :  { %1278 = vmatprep.subr.bf16.mxu0 %v2529_v40  ;;  %1442 = vmatprep.subr.bf16.mxu1 %v2531_v41  ;;  %v2618_v40 = vld [vmem:[%s3779_s1 + $0x308] ss:$16 sps:$4 sm:$0xff]   ;;  %v2623_v41 = vld [vmem:[%s3779_s1 + $0x324] ss:$16 sps:$4 sm:$0xff]  }
  0x2b   :  { %1279 = vmatpush1.bf16.msra.mxu0 %v2533_v42  ;;  %1443 = vmatpush1.bf16.msra.mxu1 %v2534_v43  ;;  %v2626_v42 = vld [vmem:[%s3779_s1 + $0x32c] ss:$16 sps:$4 sm:$0xff]   ;;  %v2621_v43 = vld [vmem:[%s3779_s1 + $0x320] ss:$16 sps:$4 sm:$0xff]  }
  0x2c   :  { %1280 = vmatprep.subr.bf16.mxu0 %v2535_v44  ;;  %1444 = vmatprep.subr.bf16.mxu1 %v2537_v45  ;;  %v2624_v44 = vld [vmem:[%s3779_s1 + $0x328] ss:$16 sps:$4 sm:$0xff]   ;;  %v2629_v45 = vld [vmem:[%s3779_s1 + $0x344] ss:$16 sps:$4 sm:$0xff]  }
  0x2f   :  { %1281 = vmatpush1.bf16.msra.mxu0 %v2539_v47  ;;  %1445 = vmatpush1.bf16.msra.mxu1 %v2540_v49  ;;  %v2627_v47 = vld [vmem:[%s3779_s1 + $0x340] ss:$16 sps:$4 sm:$0xff]   ;;  %v2635_v49 = vld [vmem:[%s3779_s1 + $0x364] ss:$16 sps:$4 sm:$0xff]  }
  0x30   :  { %1282 = vmatprep.subr.bf16.mxu0 %v2541_v50  ;;  %1446 = vmatprep.subr.bf16.mxu1 %v2543_v51  ;;  %v2638_v50 = vld [vmem:[%s3779_s1 + $0x36c] ss:$16 sps:$4 sm:$0xff]   ;;  %v2633_v51 = vld [vmem:[%s3779_s1 + $0x360] ss:$16 sps:$4 sm:$0xff]  }
  0x33   :  { %1283 = vmatpush1.bf16.msra.mxu0 %v2545_v52  ;;  %1447 = vmatpush1.bf16.msra.mxu1 %v2546_v53  ;;  %v2636_v52 = vld [vmem:[%s3779_s1 + $0x368] ss:$16 sps:$4 sm:$0xff]   ;;  %v2641_v53 = vld [vmem:[%s3779_s1 + $0x384] ss:$16 sps:$4 sm:$0xff]  }
  0x34   :  { %1284 = vmatprep.subr.bf16.mxu0 %v2547_v54  ;;  %1448 = vmatprep.subr.bf16.mxu1 %v2549_v55  ;;  %v2644_v54 = vld [vmem:[%s3779_s1 + $0x38c] ss:$16 sps:$4 sm:$0xff]   ;;  %v2639_v55 = vld [vmem:[%s3779_s1 + $0x380] ss:$16 sps:$4 sm:$0xff]  }
  0x37   :  { %1285 = vmatpush1.bf16.msra.mxu0 %v2551_v56  ;;  %1449 = vmatpush1.bf16.msra.mxu1 %v2552_v57  ;;  %v2642_v56 = vld [vmem:[%s3779_s1 + $0x388] ss:$16 sps:$4 sm:$0xff]   ;;  %v2647_v57 = vld [vmem:[%s3779_s1 + $0x3a4] ss:$16 sps:$4 sm:$0xff]  }
  0x38   :  { %1286 = vmatprep.subr.bf16.mxu0 %v2553_v58  ;;  %1450 = vmatprep.subr.bf16.mxu1 %v2555_v59  ;;  %v2650_v58 = vld [vmem:[%s3779_s1 + $0x3ac] ss:$16 sps:$4 sm:$0xff]   ;;  %v2645_v59 = vld [vmem:[%s3779_s1 + $0x3a0] ss:$16 sps:$4 sm:$0xff]  }
  0x3b   :  { %1287 = vmatpush1.bf16.msra.mxu0 %v2557_v60  ;;  %1451 = vmatpush1.bf16.msra.mxu1 %v2558_v61  ;;  %v2648_v60 = vld [vmem:[%s3779_s1 + $0x3a8] ss:$16 sps:$4 sm:$0xff]   ;;  %v2653_v61 = vld [vmem:[%s3779_s1 + $0x3c4] ss:$16 sps:$4 sm:$0xff]  }
  0x3c   :  { %1288 = vmatprep.subr.bf16.mxu0 %v2559_v62  ;;  %1452 = vmatprep.subr.bf16.mxu1 %v2561_v63  ;;  %v2656_v62 = vld [vmem:[%s3779_s1 + $0x3cc] ss:$16 sps:$4 sm:$0xff]   ;;  %v2651_v63 = vld [vmem:[%s3779_s1 + $0x3c0] ss:$16 sps:$4 sm:$0xff]  }
  0x3f   :  { %1289 = vmatpush1.bf16.msra.mxu0 %v2563_v0  ;;  %1453 = vmatpush1.bf16.msra.mxu1 %v2564_v1  ;;  %v2654_v0 = vld [vmem:[%s3779_s1 + $0x3c8] ss:$16 sps:$4 sm:$0xff]   ;;  %v2659_v1 = vld [vmem:[%s3779_s1 + $0x3e4] ss:$16 sps:$4 sm:$0xff]  }
  0x40   :  { %1299 = vmatprep.subr.bf16.mxu0 %v2569_v2  ;;  %1463 = vmatprep.subr.bf16.mxu1 %v2572_v3  ;;  %v2662_v2 = vld [vmem:[%s3779_s1 + $0x3ec] ss:$16 sps:$4 sm:$0xff]   ;;  %v2657_v3 = vld [vmem:[%s3779_s1 + $0x3e0] ss:$16 sps:$4 sm:$0xff]  }
  0x42   :  { %1291 = vmatmul.mubr.bf16.vlgmr.msra.gmra.mrb[0].mxu0 %v2166_v4  ;;  %1455 = vmatmul.mubr.bf16.vlgmr.msra.gmra.mrb[0].mxu1 %v2166_v4  ;;  %v2660_v4 = vld [vmem:[%s3779_s1 + $0x3e8] ss:$16 sps:$4 sm:$0xff]  }
  0x43   :  { %1300 = vmatpush1.bf16.msra.mxu0 %v2567_v5  ;;  %1464 = vmatpush1.bf16.msra.mxu1 %v2570_v6  ;;  %v2667_v5 = vld [vmem:[%s3779_s1 + $0x404] ss:$16 sps:$4 sm:$0xff]   ;;  %v2670_v6 = vld [vmem:[%s3779_s1 + $0x40c] ss:$16 sps:$4 sm:$0xff]  }
  0x44   :  { %1301 = vmatprep.subr.bf16.mxu0 %v2575_v7  ;;  %1465 = vmatprep.subr.bf16.mxu1 %v2578_v8  ;;  %v2168_v7 = vcombine.low %v3200_v29, %v3200_v29  ;;  %v2665_v8 = vld [vmem:[%s3779_s1 + $0x400] ss:$16 sps:$4 sm:$0xff]   ;;  %v2700_v29 = vld [vmem:[%s3779_s1 + $0x4ac] ss:$16 sps:$4 sm:$0xff]  }
  0x45   :  { %1331 = vmatprep.mubr.bf16.mxu0 %v2169_v30  ;;  %1495 = vmatprep.mubr.bf16.mxu1 %v2169_v30  ;;  %v2695_v30 = vld [vmem:[%s3779_s1 + $0x4a0] ss:$16 sps:$4 sm:$0xff]  }
  0x47   :  { %1302 = vmatpush1.bf16.msra.mxu0 %v2573_v9  ;;  %1466 = vmatpush1.bf16.msra.mxu1 %v2576_v10  ;;  %v2668_v9 = vld [vmem:[%s3779_s1 + $0x408] ss:$16 sps:$4 sm:$0xff]   ;;  %v2673_v10 = vld [vmem:[%s3779_s1 + $0x424] ss:$16 sps:$4 sm:$0xff]  }
  0x48   :  { %1303 = vmatprep.subr.bf16.mxu0 %v2581_v11  ;;  %1467 = vmatprep.subr.bf16.mxu1 %v2584_v12  ;;  %v3338_v11 = vld [vmem:[%s3778_s0 + $0x10] sm:$0xff]  ;;  %v2676_v12 = vld [vmem:[%s3779_s1 + $0x42c] ss:$16 sps:$4 sm:$0xff]  }
  0x4b   :  { %1304 = vmatpush1.bf16.msra.mxu0 %v2579_v13  ;;  %1468 = vmatpush1.bf16.msra.mxu1 %v2582_v14  ;;  %v2171_v13 = vcombine.high %v3338_v11, %v3338_v11  ;;  %v2671_v14 = vld [vmem:[%s3779_s1 + $0x420] ss:$16 sps:$4 sm:$0xff]  }
  0x4c   :  { %1305 = vmatprep.subr.bf16.mxu0 %v2587_v15  ;;  %1469 = vmatprep.subr.bf16.mxu1 %v2590_v16  ;;  %v2674_v15 = vld [vmem:[%s3779_s1 + $0x428] ss:$16 sps:$4 sm:$0xff]   ;;  %v2679_v16 = vld [vmem:[%s3779_s1 + $0x444] ss:$16 sps:$4 sm:$0xff]  }
  0x4f   :  { %1306 = vmatpush1.bf16.msra.mxu0 %v2585_v17  ;;  %1470 = vmatpush1.bf16.msra.mxu1 %v2588_v18  ;;  %v2682_v17 = vld [vmem:[%s3779_s1 + $0x44c] ss:$16 sps:$4 sm:$0xff]   ;;  %v2677_v18 = vld [vmem:[%s3779_s1 + $0x440] ss:$16 sps:$4 sm:$0xff]  }
  0x50   :  { %1307 = vmatprep.subr.bf16.mxu0 %v2593_v19  ;;  %1471 = vmatprep.subr.bf16.mxu1 %v2596_v20  ;;  %v2680_v19 = vld [vmem:[%s3779_s1 + $0x448] ss:$16 sps:$4 sm:$0xff]   ;;  %v2685_v20 = vld [vmem:[%s3779_s1 + $0x464] ss:$16 sps:$4 sm:$0xff]  }
  0x53   :  { %1308 = vmatpush1.bf16.msra.mxu0 %v2591_v21  ;;  %1472 = vmatpush1.bf16.msra.mxu1 %v2594_v22  ;;  %v2688_v21 = vld [vmem:[%s3779_s1 + $0x46c] ss:$16 sps:$4 sm:$0xff]   ;;  %v2683_v22 = vld [vmem:[%s3779_s1 + $0x460] ss:$16 sps:$4 sm:$0xff]  }
  0x54   :  { %1309 = vmatprep.subr.bf16.mxu0 %v2599_v23  ;;  %1473 = vmatprep.subr.bf16.mxu1 %v2602_v24  ;;  %v2686_v23 = vld [vmem:[%s3779_s1 + $0x468] ss:$16 sps:$4 sm:$0xff]   ;;  %v2691_v24 = vld [vmem:[%s3779_s1 + $0x484] ss:$16 sps:$4 sm:$0xff]  }
  0x57   :  { %1310 = vmatpush1.bf16.msra.mxu0 %v2597_v25  ;;  %1474 = vmatpush1.bf16.msra.mxu1 %v2600_v26  ;;  %v2694_v25 = vld [vmem:[%s3779_s1 + $0x48c] ss:$16 sps:$4 sm:$0xff]   ;;  %v2689_v26 = vld [vmem:[%s3779_s1 + $0x480] ss:$16 sps:$4 sm:$0xff]  }
  0x58   :  { %1311 = vmatprep.subr.bf16.mxu0 %v2605_v27  ;;  %1475 = vmatprep.subr.bf16.mxu1 %v2608_v28  ;;  %v2692_v27 = vld [vmem:[%s3779_s1 + $0x488] ss:$16 sps:$4 sm:$0xff]   ;;  %v2697_v28 = vld [vmem:[%s3779_s1 + $0x4a4] ss:$16 sps:$4 sm:$0xff]  }
  0x5b   :  { %1312 = vmatpush1.bf16.msra.mxu0 %v2603_v31  ;;  %1476 = vmatpush1.bf16.msra.mxu1 %v2606_v32  ;;  %v2698_v31 = vld [vmem:[%s3779_s1 + $0x4a8] ss:$16 sps:$4 sm:$0xff]   ;;  %v2703_v32 = vld [vmem:[%s3779_s1 + $0x4c4] ss:$16 sps:$4 sm:$0xff]  }
  0x5c   :  { %1313 = vmatprep.subr.bf16.mxu0 %v2611_v33  ;;  %1477 = vmatprep.subr.bf16.mxu1 %v2614_v34  ;;  %v2706_v33 = vld [vmem:[%s3779_s1 + $0x4cc] ss:$16 sps:$4 sm:$0xff]   ;;  %v2701_v34 = vld [vmem:[%s3779_s1 + $0x4c0] ss:$16 sps:$4 sm:$0xff]  }
  0x5f   :  { %1314 = vmatpush1.bf16.msra.mxu0 %v2609_v35  ;;  %1478 = vmatpush1.bf16.msra.mxu1 %v2612_v36  ;;  %v2704_v35 = vld [vmem:[%s3779_s1 + $0x4c8] ss:$16 sps:$4 sm:$0xff]   ;;  %v2709_v36 = vld [vmem:[%s3779_s1 + $0x4e4] ss:$16 sps:$4 sm:$0xff]  }
  0x60   :  { %1315 = vmatprep.subr.bf16.mxu0 %v2617_v37  ;;  %1479 = vmatprep.subr.bf16.mxu1 %v2620_v38  ;;  %v2712_v37 = vld [vmem:[%s3779_s1 + $0x4ec] ss:$16 sps:$4 sm:$0xff]   ;;  %v2707_v38 = vld [vmem:[%s3779_s1 + $0x4e0] ss:$16 sps:$4 sm:$0xff]  }
  0x63   :  { %1316 = vmatpush1.bf16.msra.mxu0 %v2615_v39  ;;  %1480 = vmatpush1.bf16.msra.mxu1 %v2618_v40  ;;  %v2710_v39 = vld [vmem:[%s3779_s1 + $0x4e8] ss:$16 sps:$4 sm:$0xff]   ;;  %v2715_v40 = vld [vmem:[%s3779_s1 + $0x504] ss:$16 sps:$4 sm:$0xff]  }
  0x64   :  { %1317 = vmatprep.subr.bf16.mxu0 %v2623_v41  ;;  %1481 = vmatprep.subr.bf16.mxu1 %v2626_v42  ;;  %v2718_v41 = vld [vmem:[%s3779_s1 + $0x50c] ss:$16 sps:$4 sm:$0xff]   ;;  %v2713_v42 = vld [vmem:[%s3779_s1 + $0x500] ss:$16 sps:$4 sm:$0xff]  }
  0x67   :  { %1318 = vmatpush1.bf16.msra.mxu0 %v2621_v43  ;;  %1482 = vmatpush1.bf16.msra.mxu1 %v2624_v44  ;;  %v2716_v43 = vld [vmem:[%s3779_s1 + $0x508] ss:$16 sps:$4 sm:$0xff]   ;;  %v2721_v44 = vld [vmem:[%s3779_s1 + $0x524] ss:$16 sps:$4 sm:$0xff]  }
  0x68   :  { %1319 = vmatprep.subr.bf16.mxu0 %v2629_v45  ;;  %1483 = vmatprep.subr.bf16.mxu1 %v2632_v46  ;;  %v2724_v45 = vld [vmem:[%s3779_s1 + $0x52c] ss:$16 sps:$4 sm:$0xff]   ;;  %v2719_v46 = vld [vmem:[%s3779_s1 + $0x520] ss:$16 sps:$4 sm:$0xff]  }
  0x6b   :  { %1320 = vmatpush1.bf16.msra.mxu0 %v2627_v47  ;;  %1484 = vmatpush1.bf16.msra.mxu1 %v2630_v48  ;;  %v2722_v47 = vld [vmem:[%s3779_s1 + $0x528] ss:$16 sps:$4 sm:$0xff]   ;;  %v2727_v48 = vld [vmem:[%s3779_s1 + $0x544] ss:$16 sps:$4 sm:$0xff]  }
  0x6c   :  { %1321 = vmatprep.subr.bf16.mxu0 %v2635_v49  ;;  %1485 = vmatprep.subr.bf16.mxu1 %v2638_v50  ;;  %v2730_v49 = vld [vmem:[%s3779_s1 + $0x54c] ss:$16 sps:$4 sm:$0xff]  }
  0x6f   :  { %1322 = vmatpush1.bf16.msra.mxu0 %v2633_v51  ;;  %1486 = vmatpush1.bf16.msra.mxu1 %v2636_v52 }
  0x70   :  { %1323 = vmatprep.subr.bf16.mxu0 %v2641_v53  ;;  %1487 = vmatprep.subr.bf16.mxu1 %v2644_v54 }
  0x73   :  { %1324 = vmatpush1.bf16.msra.mxu0 %v2639_v55  ;;  %1488 = vmatpush1.bf16.msra.mxu1 %v2642_v56 }
  0x74   :  { %1325 = vmatprep.subr.bf16.mxu0 %v2647_v57  ;;  %1489 = vmatprep.subr.bf16.mxu1 %v2650_v58 }
  0x77   :  { %1326 = vmatpush1.bf16.msra.mxu0 %v2645_v59  ;;  %1490 = vmatpush1.bf16.msra.mxu1 %v2648_v60 }
  0x78   :  { %1327 = vmatprep.subr.bf16.mxu0 %v2653_v61  ;;  %1491 = vmatprep.subr.bf16.mxu1 %v2656_v62 }
  0x7b   :  { %1328 = vmatpush1.bf16.msra.mxu0 %v2651_v63  ;;  %1492 = vmatpush1.bf16.msra.mxu1 %v2654_v0 }
  0x7c   :  { %1329 = vmatprep.subr.bf16.mxu0 %v2659_v1  ;;  %1493 = vmatprep.subr.bf16.mxu1 %v2662_v2 }
  0x7f   :  { %1330 = vmatpush1.bf16.msra.mxu0 %v2657_v3  ;;  %1494 = vmatpush1.bf16.msra.mxu1 %v2660_v4 }
  0x80   :  { %1340 = vmatprep.subr.bf16.mxu0 %v2667_v5  ;;  %1504 = vmatprep.subr.bf16.mxu1 %v2670_v6 }
  0x82   :  { %1332 = vmatmul.mubr.bf16.vlgmr.msra.gmra.mrb[0].mxu0 %v2168_v7  ;;  %1496 = vmatmul.mubr.bf16.vlgmr.msra.gmra.mrb[0].mxu1 %v2168_v7 }
  0x83   :  { %1341 = vmatpush1.bf16.msra.mxu0 %v2665_v8  ;;  %1505 = vmatpush1.bf16.msra.mxu1 %v2668_v9 }
  0x84   :  { %1342 = vmatprep.subr.bf16.mxu0 %v2673_v10  ;;  %1506 = vmatprep.subr.bf16.mxu1 %v2676_v12 }
  0x85   :  { %1372 = vmatprep.mubr.bf16.mxu0 %v2171_v13  ;;  %1536 = vmatprep.mubr.bf16.mxu1 %v2171_v13 }
  0x87   :  { %1343 = vmatpush1.bf16.msra.mxu0 %v2671_v14  ;;  %1507 = vmatpush1.bf16.msra.mxu1 %v2674_v15 }
  0x88   :  { %1344 = vmatprep.subr.bf16.mxu0 %v2679_v16  ;;  %1508 = vmatprep.subr.bf16.mxu1 %v2682_v17 }
  0x8b   :  { %1345 = vmatpush1.bf16.msra.mxu0 %v2677_v18  ;;  %1509 = vmatpush1.bf16.msra.mxu1 %v2680_v19 }
  0x8c   :  { %1346 = vmatprep.subr.bf16.mxu0 %v2685_v20  ;;  %1510 = vmatprep.subr.bf16.mxu1 %v2688_v21 }
  0x8f   :  { %1347 = vmatpush1.bf16.msra.mxu0 %v2683_v22  ;;  %1511 = vmatpush1.bf16.msra.mxu1 %v2686_v23 }
  0x90   :  { %1348 = vmatprep.subr.bf16.mxu0 %v2691_v24  ;;  %1512 = vmatprep.subr.bf16.mxu1 %v2694_v25 }
  0x93   :  { %1349 = vmatpush1.bf16.msra.mxu0 %v2689_v26  ;;  %1513 = vmatpush1.bf16.msra.mxu1 %v2692_v27 }
  0x94   :  { %1350 = vmatprep.subr.bf16.mxu0 %v2697_v28  ;;  %1514 = vmatprep.subr.bf16.mxu1 %v2700_v29 }
  0x97   :  { %1351 = vmatpush1.bf16.msra.mxu0 %v2695_v30  ;;  %1515 = vmatpush1.bf16.msra.mxu1 %v2698_v31 }
  0x98   :  { %1352 = vmatprep.subr.bf16.mxu0 %v2703_v32  ;;  %1516 = vmatprep.subr.bf16.mxu1 %v2706_v33 }
  0x9b   :  { %1353 = vmatpush1.bf16.msra.mxu0 %v2701_v34  ;;  %1517 = vmatpush1.bf16.msra.mxu1 %v2704_v35 }
  0x9c   :  { %1354 = vmatprep.subr.bf16.mxu0 %v2709_v36  ;;  %1518 = vmatprep.subr.bf16.mxu1 %v2712_v37 }
  0x9f   :  { %1355 = vmatpush1.bf16.msra.mxu0 %v2707_v38  ;;  %1519 = vmatpush1.bf16.msra.mxu1 %v2710_v39 }
  0xa0   :  { %1356 = vmatprep.subr.bf16.mxu0 %v2715_v40  ;;  %1520 = vmatprep.subr.bf16.mxu1 %v2718_v41 }
  0xa3   :  { %1357 = vmatpush1.bf16.msra.mxu0 %v2713_v42  ;;  %1521 = vmatpush1.bf16.msra.mxu1 %v2716_v43 }
  0xa4   :  { %1358 = vmatprep.subr.bf16.mxu0 %v2721_v44  ;;  %1522 = vmatprep.subr.bf16.mxu1 %v2724_v45 }
  0xa5   :  { %12 = vsyncpa [#allocation3], 0  ;;  %v2725_v50 = vld [vmem:[%s3779_s1 + $0x540] ss:$16 sps:$4 sm:$0xff]   ;;  %v2728_v51 = vld [vmem:[%s3779_s1 + $0x548] ss:$16 sps:$4 sm:$0xff]   ;;  %v2170_v10 = vcombine.low %v3338_v11, %v3338_v11 }
  0xa6   :  { %v2733_v52 = vld [vmem:[%s3779_s1 + $0x564] ss:$16 sps:$4 sm:$0xff]   ;;  %v2736_v53 = vld [vmem:[%s3779_s1 + $0x56c] ss:$16 sps:$4 sm:$0xff]   ;;  %v2731_v54 = vld [vmem:[%s3779_s1 + $0x560] ss:$16 sps:$4 sm:$0xff]  }
  0xa7   :  { %1359 = vmatpush1.bf16.msra.mxu0 %v2719_v46  ;;  %1523 = vmatpush1.bf16.msra.mxu1 %v2722_v47  ;;  %v2734_v55 = vld [vmem:[%s3779_s1 + $0x568] ss:$16 sps:$4 sm:$0xff]   ;;  %v2739_v56 = vld [vmem:[%s3779_s1 + $0x584] ss:$16 sps:$4 sm:$0xff]   ;;  %v2742_v57 = vld [vmem:[%s3779_s1 + $0x58c] ss:$16 sps:$4 sm:$0xff]  }
  0xa8   :  { %1360 = vmatprep.subr.bf16.mxu0 %v2727_v48  ;;  %1524 = vmatprep.subr.bf16.mxu1 %v2730_v49  ;;  %v2737_v58 = vld [vmem:[%s3779_s1 + $0x580] ss:$16 sps:$4 sm:$0xff]   ;;  %v2740_v59 = vld [vmem:[%s3779_s1 + $0x588] ss:$16 sps:$4 sm:$0xff]   ;;  %v2745_v60 = vld [vmem:[%s3779_s1 + $0x5a4] ss:$16 sps:$4 sm:$0xff]  }
  0xa9   :  { %v2748_v61 = vld [vmem:[%s3779_s1 + $0x5ac] ss:$16 sps:$4 sm:$0xff]   ;;  %v2743_v62 = vld [vmem:[%s3779_s1 + $0x5a0] ss:$16 sps:$4 sm:$0xff]   ;;  %v2746_v63 = vld [vmem:[%s3779_s1 + $0x5a8] ss:$16 sps:$4 sm:$0xff]  }
  0xaa   :  { %v2751_v0 = vld [vmem:[%s3779_s1 + $0x5c4] ss:$16 sps:$4 sm:$0xff]   ;;  %v2754_v1 = vld [vmem:[%s3779_s1 + $0x5cc] ss:$16 sps:$4 sm:$0xff]   ;;  %v2749_v2 = vld [vmem:[%s3779_s1 + $0x5c0] ss:$16 sps:$4 sm:$0xff]  }
  0xab   :  { %1361 = vmatpush1.bf16.msra.mxu0 %v2725_v50  ;;  %1525 = vmatpush1.bf16.msra.mxu1 %v2728_v51  ;;  %v2752_v3 = vld [vmem:[%s3779_s1 + $0x5c8] ss:$16 sps:$4 sm:$0xff]   ;;  %v2757_v4 = vld [vmem:[%s3779_s1 + $0x5e4] ss:$16 sps:$4 sm:$0xff]   ;;  %v2760_v5 = vld [vmem:[%s3779_s1 + $0x5ec] ss:$16 sps:$4 sm:$0xff]  }
  0xac   :  { %1362 = vmatprep.subr.bf16.mxu0 %v2733_v52  ;;  %1526 = vmatprep.subr.bf16.mxu1 %v2736_v53  ;;  %v2755_v6 = vld [vmem:[%s3779_s1 + $0x5e0] ss:$16 sps:$4 sm:$0xff]   ;;  %v2758_v7 = vld [vmem:[%s3779_s1 + $0x5e8] ss:$16 sps:$4 sm:$0xff]   ;;  %v2765_v8 = vld [vmem:[%s3779_s1 + $0x604] ss:$16 sps:$4 sm:$0xff]  }
  0xad   :  { %v2802_v9 = vld [vmem:[%s3781_s3 + $0x104] ss:$8 sps:$4 sm:$0xff]   ;;  %v2763_v12 = vld [vmem:[%s3779_s1 + $0x600] ss:$16 sps:$4 sm:$0xff]   ;;  %v2808_v11 = vld [vmem:[%s3781_s3 + $0x114] ss:$8 sps:$4 sm:$0xff]  }
  0xae   :  { %v2769_v13 = vld [vmem:[%s3779_s1 + $0x60c] ss:$16 sps:$4 sm:$0xff]   ;;  %v2800_v14 = vld [vmem:[%s3781_s3 + $0x100] ss:$8 sps:$4 sm:$0xff]   ;;  %v2882_v15 = vmov 0   ;;  %vm1254_vm0 = vcmask 130048  }
  0xaf   :  { %1363 = vmatpush1.bf16.msra.mxu0 %v2731_v54  ;;  %1527 = vmatpush1.bf16.msra.mxu1 %v2734_v55  ;;  %v2806_v16 = vld [vmem:[%s3781_s3 + $0x110] ss:$8 sps:$4 sm:$0xff]   ;;  %v2772_v19 = vld [vmem:[%s3781_s3 + $0x4] ss:$8 sps:$4 sm:$0xff]   ;;  %v2770_v20 = vld [vmem:[%s3781_s3] ss:$8 sps:$4 sm:$0xff]  }
  0xb0   :  { %1364 = vmatprep.subr.bf16.mxu0 %v2739_v56  ;;  %1528 = vmatprep.subr.bf16.mxu1 %v2742_v57  ;;  %v2766_v17 = vld [vmem:[%s3778_s0 + $0x18] ss:$0 sps:$4 sm:$0xff]   ;;  %v2775_v21 = vld [vmem:[%s3781_s3 + $0x14] ss:$8 sps:$4 sm:$0xff]   ;;  %v2778_v23 = vld [vmem:[%s3781_s3 + $0x24] ss:$8 sps:$4 sm:$0xff]  }
  0xb1   :  { %v2767_v18 = vld [vmem:[%s3779_s1 + $0x608] ss:$16 sps:$4 sm:$0xff]   ;;  %v2781_v25 = vld [vmem:[%s3781_s3 + $0x34] ss:$8 sps:$4 sm:$0xff]   ;;  %v2784_v27 = vld [vmem:[%s3781_s3 + $0x44] ss:$8 sps:$4 sm:$0xff]  }
  0xb2   :  { %v2773_v22 = vld [vmem:[%s3781_s3 + $0x10] ss:$8 sps:$4 sm:$0xff]   ;;  %v2776_v24 = vld [vmem:[%s3781_s3 + $0x20] ss:$8 sps:$4 sm:$0xff]   ;;  %v2787_v29 = vld [vmem:[%s3781_s3 + $0x54] ss:$8 sps:$4 sm:$0xff]  }
  0xb3   :  { %1365 = vmatpush1.bf16.msra.mxu0 %v2737_v58  ;;  %1529 = vmatpush1.bf16.msra.mxu1 %v2740_v59  ;;  %v2779_v26 = vld [vmem:[%s3781_s3 + $0x30] ss:$8 sps:$4 sm:$0xff]   ;;  %v2782_v28 = vld [vmem:[%s3781_s3 + $0x40] ss:$8 sps:$4 sm:$0xff]   ;;  %v2790_v31 = vld [vmem:[%s3781_s3 + $0x64] ss:$8 sps:$4 sm:$0xff]  }
  0xb4   :  { %1366 = vmatprep.subr.bf16.mxu0 %v2745_v60  ;;  %1530 = vmatprep.subr.bf16.mxu1 %v2748_v61  ;;  %v2785_v30 = vld [vmem:[%s3781_s3 + $0x50] ss:$8 sps:$4 sm:$0xff]   ;;  %v2788_v32 = vld [vmem:[%s3781_s3 + $0x60] ss:$8 sps:$4 sm:$0xff]   ;;  %v2793_v33 = vld [vmem:[%s3781_s3 + $0x74] ss:$8 sps:$4 sm:$0xff]  }
  0xb5   :  { %v2791_v34 = vld [vmem:[%s3781_s3 + $0x70] ss:$8 sps:$4 sm:$0xff]   ;;  %v2796_v35 = vld [vmem:[%s3781_s3 + $0x84] ss:$8 sps:$4 sm:$0xff]   ;;  %v2794_v36 = vld [vmem:[%s3781_s3 + $0x80] ss:$8 sps:$4 sm:$0xff]  }
  0xb6   :  { %v2799_v37 = vld [vmem:[%s3781_s3 + $0x94] ss:$8 sps:$4 sm:$0xff]   ;;  %v2797_v38 = vld [vmem:[%s3781_s3 + $0x90] ss:$8 sps:$4 sm:$0xff]   ;;  %v2805_v39 = vld [vmem:[%s3781_s3 + $0xa4] ss:$8 sps:$4 sm:$0xff]  }
  0xb7   :  { %1367 = vmatpush1.bf16.msra.mxu0 %v2743_v62  ;;  %1531 = vmatpush1.bf16.msra.mxu1 %v2746_v63  ;;  %v2803_v40 = vld [vmem:[%s3781_s3 + $0xa0] ss:$8 sps:$4 sm:$0xff]   ;;  %v2811_v41 = vld [vmem:[%s3781_s3 + $0xb4] ss:$8 sps:$4 sm:$0xff]   ;;  %v2814_v42 = vld [vmem:[%s3781_s3 + $0x124] ss:$8 sps:$4 sm:$0xff]  }
  0xb8   :  { %1368 = vmatprep.subr.bf16.mxu0 %v2751_v0  ;;  %1532 = vmatprep.subr.bf16.mxu1 %v2754_v1  ;;  %v2809_v43 = vld [vmem:[%s3781_s3 + $0xb0] ss:$8 sps:$4 sm:$0xff]   ;;  %v2812_v44 = vld [vmem:[%s3781_s3 + $0x120] ss:$8 sps:$4 sm:$0xff]   ;;  %v2817_v46 = vld [vmem:[%s3781_s3 + $0xc4] ss:$8 sps:$4 sm:$0xff]   ;;  %v230_v1 = vlaneseq }
  0xb9   :  { %v2815_v45 = vld [vmem:[%s3781_s3 + $0xc0] ss:$8 sps:$4 sm:$0xff]   ;;  %v2818_v47 = vld [vmem:[%s3781_s3 + $0x130] ss:$8 sps:$4 sm:$0xff]   ;;  %v2820_v48 = vld [vmem:[%s3781_s3 + $0x134] ss:$8 sps:$4 sm:$0xff]  }
  0xba   :  { %v2823_v49 = vld [vmem:[%s3781_s3 + $0xd4] ss:$8 sps:$4 sm:$0xff]   ;;  %v2826_v50 = vld [vmem:[%s3781_s3 + $0x144] ss:$8 sps:$4 sm:$0xff]   ;;  %v2821_v51 = vld [vmem:[%s3781_s3 + $0xd0] ss:$8 sps:$4 sm:$0xff]  }
  0xbb   :  { %1369 = vmatpush1.bf16.msra.mxu0 %v2749_v2  ;;  %1533 = vmatpush1.bf16.msra.mxu1 %v2752_v3  ;;  %v2824_v52 = vld [vmem:[%s3781_s3 + $0x140] ss:$8 sps:$4 sm:$0xff]   ;;  %v2829_v53 = vld [vmem:[%s3781_s3 + $0xe4] ss:$8 sps:$4 sm:$0xff]   ;;  %v2832_v54 = vld [vmem:[%s3781_s3 + $0x154] ss:$8 sps:$4 sm:$0xff]  }
  0xbc   :  { %1370 = vmatprep.subr.bf16.mxu0 %v2757_v4  ;;  %1534 = vmatprep.subr.bf16.mxu1 %v2760_v5  ;;  %v2827_v55 = vld [vmem:[%s3781_s3 + $0xe0] ss:$8 sps:$4 sm:$0xff]   ;;  %v2830_v56 = vld [vmem:[%s3781_s3 + $0x150] ss:$8 sps:$4 sm:$0xff]   ;;  %v2835_v57 = vld [vmem:[%s3781_s3 + $0xf4] ss:$8 sps:$4 sm:$0xff]  }
  0xbd   :  { %v2838_v58 = vld [vmem:[%s3781_s3 + $0x164] ss:$8 sps:$4 sm:$0xff]   ;;  %v2833_v59 = vld [vmem:[%s3781_s3 + $0xf0] ss:$8 sps:$4 sm:$0xff]   ;;  %v2836_v60 = vld [vmem:[%s3781_s3 + $0x160] ss:$8 sps:$4 sm:$0xff]  }
  0xbe   :  { %v2841_v61 = vld [vmem:[%s3781_s3 + $0x174] ss:$8 sps:$4 sm:$0xff]   ;;  %v2839_v62 = vld [vmem:[%s3781_s3 + $0x170] ss:$8 sps:$4 sm:$0xff]   ;;  %v2844_v63 = vld [vmem:[%s3781_s3 + $0x184] ss:$8 sps:$4 sm:$0xff]  }
  0xbf   :  { %1371 = vmatpush1.bf16.msra.mxu0 %v2755_v6  ;;  %1535 = vmatpush1.bf16.msra.mxu1 %v2758_v7  ;;  %v2842_v0 = vld [vmem:[%s3781_s3 + $0x180] ss:$8 sps:$4 sm:$0xff]   ;;  %v3691_v5 = vshrl.u32 %v230_v1, 7  ;;  %vm2106_vm1 = vcmask 1043456   ;;  %vm2102_vm2 = vcmask 588800   ;;  %s2883_s3 = smov [#allocation2]  }
  0xc0   :  { %1381 = vmatprep.subr.bf16.mxu0 %v2765_v8  ;;  %1950 = vmatprep.subr.bf16.mxu1 %v2802_v9  ;;  %v228_v9 = vld [vmem:[%s3780_s2] sm:$0xf]  ;;  %s2158_s12 = sshll.u32 %s2883_s3, 4  ;;  %vm2150_vm3 = vcmask 80896   ;;  %s2159_s12 = int_to_ptr.vmem [resolvable:$true] %s2158_s12 }
  0xc1   :  { %v232_v7 = vsub.s32 0, %v3691_v5  ;;  %v236_v8 = vsub.s32 1, %v3691_v5  ;;  %s2858_s13 = scalar_lea.vmem %s2159_s12, 128  ;;  %p2863_p1 = scmp.lt.s32.totalorder %s2159_s12, %s2159_s12 }
  0xc2   :  { %1373 = vmatmul.mubr.bf16.vlgmr.msra.gmra.mrb[0].mxu0 %v2170_v10  ;;  %1537 = vmatmul.mubr.bf16.vlgmr.msra.gmra.mrb[0].mxu1 %v2170_v10  ;;  %p2859_p0 = scmp.ne.s32.totalorder %s2159_s12, %s2858_s13  ;;  %p2864_p2 = scmp.lt.s32.totalorder %s2858_s13, %s2858_s13 }
  0xc3   :  { %1382 = vmatpush1.bf16.msra.mxu0 %v2763_v12  ;;  %1413 = vmatprep.mubr.bf16.mxu0 %v2882_v15  ;;  %v233_v10 = vrot.slane %v228_v9, %v232_v7  ;;  %v237_v12 = vrot.slane %v228_v9, %v236_v8 }
  0xc4   :  { %1545 = vmatprep.subr.bf16.mxu0 %v2769_v13  ;;  %1951 = vmatpush1.bf16.msra.mxu1 %v2800_v14  ;;  %v240_v13 = vsub.s32 2, %v3691_v5  ;;  %v244_v14 = vsub.s32 3, %v3691_v5  ;;  %p2865_p3 = por %p2864_p2, %p2863_p1 }
  0xc5   :  { %1952 = vmatprep.subr.bf16.mxu1 %v2808_v11 }
  0xc6   :  { %p2866_p4 = pnand %p2865_p3, %p2859_p0 }
  0xc8   :  { %1953 = vmatpush1.bf16.msra.mxu1 %v2806_v16 }
  0xc9   :  { %1954 = vmatprep.subr.bf16.mxu1 %v2814_v42  ;;  %v2848_v42 = vld [vmem:[%s3783_s5 + $0x18] sm:$0xff]  }
  0xcc   :  { %1955 = vmatpush1.bf16.msra.mxu1 %v2812_v44  ;;  %v2850_v44 = vld [vmem:[%s3783_s5 + $0x28] sm:$0xff]  }
  0xcd   :  { %1956 = vmatprep.subr.bf16.mxu1 %v2820_v48  ;;  %v2854_v48 = vld [vmem:[%s3783_s5 + $0x48] sm:$0xff]  }
  0xce   :  { %2369 = vmatmul.mubr.msk.bf16.vlgmr.msra.gmra.mrb[0].mxu0 %vm1254_vm0, %v2766_v17 }
  0xcf   :  { %1546 = vmatpush1.bf16.msra.mxu0 %v2767_v18  ;;  %1577 = vmatprep.mubr.bf16.mxu0 %v2882_v15 }
  0xd0   :  { %1909 = vmatprep.subr.bf16.mxu0 %v2772_v19  ;;  %1957 = vmatpush1.bf16.msra.mxu1 %v2818_v47  ;;  %v2853_v47 = vld [vmem:[%s3783_s5 + $0x40] sm:$0xff]  }
  0xd1   :  { %1958 = vmatprep.subr.bf16.mxu1 %v2826_v50  ;;  %v2856_v50 = vld [vmem:[%s3783_s5 + $0x58] sm:$0xff]  }
  0xd4   :  { %1959 = vmatpush1.bf16.msra.mxu1 %v2824_v52 }
  0xd5   :  { %1960 = vmatprep.subr.bf16.mxu1 %v2832_v54 }
  0xd6   :  { %2370 = vmatmul.mubr.msk.bf16.vlgmr.msra.gmra.mrb[4].mxu0 %vm1254_vm0, %v2766_v17 }
  0xd7   :  { %1910 = vmatpush1.bf16.msra.mxu0 %v2770_v20  ;;  %v241_v20 = vrot.slane %v228_v9, %v240_v13 }
  0xd8   :  { %1911 = vmatprep.subr.bf16.mxu0 %v2775_v21  ;;  %1961 = vmatpush1.bf16.msra.mxu1 %v2830_v56 }
  0xd9   :  { %1962 = vmatprep.subr.bf16.mxu1 %v2838_v58 }
  0xdb   :  { %1912 = vmatpush1.bf16.msra.mxu0 %v2773_v22 }
  0xdc   :  { %1913 = vmatprep.subr.bf16.mxu0 %v2778_v23  ;;  %1963 = vmatpush1.bf16.msra.mxu1 %v2836_v60  ;;  %v245_v23 = vrot.slane %v228_v9, %v244_v14  ;;  %v2422_v9 = vld [vmem:[%s3784_s6] ss:$0 sm:$0xff] }
  0xdd   :  { %1964 = vmatprep.subr.bf16.mxu1 %v2841_v61 }
  0xdf   :  { %1914 = vmatpush1.bf16.msra.mxu0 %v2776_v24 }
  0xe0   :  { %1915 = vmatprep.subr.bf16.mxu0 %v2781_v25  ;;  %1965 = vmatpush1.bf16.msra.mxu1 %v2839_v62 }
  0xe1   :  { %1966 = vmatprep.subr.bf16.mxu1 %v2844_v63 }
  0xe3   :  { %1916 = vmatpush1.bf16.msra.mxu0 %v2779_v26 }
  0xe4   :  { %1917 = vmatprep.subr.bf16.mxu0 %v2784_v27  ;;  %1967 = vmatpush1.bf16.msra.mxu1 %v2842_v0 }
  0xe5   :  { %2110 = vmatprep.subr.bf16.mxu1 %v2882_v15 }
  0xe7   :  { %1918 = vmatpush1.bf16.msra.mxu0 %v2782_v28 }
  0xe8   :  { %1919 = vmatprep.subr.bf16.mxu0 %v2787_v29 }
  0xeb   :  { %1920 = vmatpush1.bf16.msra.mxu0 %v2785_v30 }
  0xec   :  { %1921 = vmatprep.subr.bf16.mxu0 %v2790_v31 }
  0xef   :  { %1922 = vmatpush1.bf16.msra.mxu0 %v2788_v32 }
  0xf0   :  { %1923 = vmatprep.subr.bf16.mxu0 %v2793_v33 }
  0xf3   :  { %1924 = vmatpush1.bf16.msra.mxu0 %v2791_v34 }
  0xf4   :  { %1925 = vmatprep.subr.bf16.mxu0 %v2796_v35 }
  0xf7   :  { %1926 = vmatpush1.bf16.msra.mxu0 %v2794_v36 }
  0xf8   :  { %1927 = vmatprep.subr.bf16.mxu0 %v2799_v37 }
  0xfb   :  { %1928 = vmatpush1.bf16.msra.mxu0 %v2797_v38  ;;  %v2845_v38 = vld [vmem:[%s3783_s5] sm:$0xff]  }
  0xfc   :  { %1929 = vmatprep.subr.bf16.mxu0 %v2805_v39 }
  0xff   :  { %1930 = vmatpush1.bf16.msra.mxu0 %v2803_v40  ;;  %v2846_v40 = vld [vmem:[%s3783_s5 + $0x8] sm:$0xff]  }
 0x100   :  { %1931 = vmatprep.subr.bf16.mxu0 %v2811_v41  ;;  %v2847_v41 = vld [vmem:[%s3783_s5 + $0x10] sm:$0xff]  }
 0x103   :  { %1932 = vmatpush1.bf16.msra.mxu0 %v2809_v43  ;;  %v2849_v43 = vld [vmem:[%s3783_s5 + $0x20] sm:$0xff]  }
 0x104   :  { %1933 = vmatprep.subr.bf16.mxu0 %v2817_v46  ;;  %v2852_v46 = vld [vmem:[%s3783_s5 + $0x38] sm:$0xff]  }
 0x107   :  { %1934 = vmatpush1.bf16.msra.mxu0 %v2815_v45  ;;  %v2851_v45 = vld [vmem:[%s3783_s5 + $0x30] sm:$0xff]  }
 0x108   :  { %1935 = vmatprep.subr.bf16.mxu0 %v2823_v49  ;;  %v2855_v49 = vld [vmem:[%s3783_s5 + $0x50] sm:$0xff]  }
 0x10b   :  { %1936 = vmatpush1.bf16.msra.mxu0 %v2821_v51  ;;  %v2857_v51 = vld [vmem:[%s3783_s5 + $0x60] ss:$0 sps:$4 sm:$0xff]  }
 0x10c   :  { %1937 = vmatprep.subr.bf16.mxu0 %v2829_v53  ;;  %v2108_v52 = vsel %vm2106_vm1, %v2857_v51, 0  ;;  %v1644_v53 = vld [vmem:[%s3782_s4] sm:$0x3] }
 0x10d   :  { %v1649_v54 = vrot.slane %v1644_v53, %v232_v7 }
 0x10f   :  { %1938 = vmatpush1.bf16.msra.mxu0 %v2827_v55 }
 0x110   :  { %1939 = vmatprep.subr.bf16.mxu0 %v2835_v57 }
 0x113   :  { %1940 = vmatpush1.bf16.msra.mxu0 %v2833_v59 }
 0x195   :  { %v1538_v2 = vpop.f32.mrb[0].mxu1 }
 0x196   :  { %v1540_v3 = vpop.f32.mrb[1].mxu1  ;;  %v2439_v26 = vadd.f32 %v1538_v2, %v241_v20 }
 0x197   :  { %v1542_v4 = vpop.f32.mrb[2].mxu1  ;;  %v2441_v28 = vadd.f32 %v1540_v3, %v245_v23 }
 0x198   :  { %v1543_v6 = vpop.f32.mrb[3].mxu1 }
 0x1a1   :  { %v1415_v11 = vpop.f32.mrb[0].mxu0 }
 0x1a2   :  { %v2437_v16 = vadd.f32 %v1415_v11, %v233_v10  ;;  %v1417_v17 = vpop.f32.mrb[1].mxu0 }
 0x1a3   :  { %v2438_v18 = vadd.f32 %v1417_v17, %v237_v12  ;;  %v1419_v19 = vpop.f32.mrb[2].mxu0 }
 0x1a4   :  { %v1586_v21 = vmax.f32 %v2437_v16, 0.0  ;;  %v1420_v22 = vpop.f32.mrb[3].mxu0 }
 0x1a5   :  { %v1587_v24 = vmax.f32 %v2438_v18, 0.0 }
 0x1a6   :  { %v1590_v27 = vpack.c.bf16 %v1586_v21, %v1586_v21 }
 0x1a7   :  { %v1591_v25 = vpack.c.bf16 %v1587_v24, %v1587_v24 }
 0x1a9   :  { %v1579_v29 = vpop.f32.mrb[4].mxu0  ;;  %1941 = vmatprep.mubr.bf16.mxu0 %v1591_v25 }
 0x1aa   :  { %v2440_v30 = vadd.f32 %v2439_v26, %v1579_v29  ;;  %v1581_v31 = vpop.f32.mrb[5].mxu0  ;;  %1942 = vmatmul.mubr.bf16.vlgmr.msra.gmra.mrb[8].mxu0 %v1590_v27 }
 0x1ab   :  { %v2442_v32 = vadd.f32 %v2441_v28, %v1581_v31  ;;  %v1583_v33 = vpop.f32.mrb[6].mxu0 }
 0x1ac   :  { %v1588_v34 = vmax.f32 %v2440_v30, 0.0  ;;  %v1584_v35 = vpop.f32.mrb[7].mxu0 }
 0x1ad   :  { %v1589_v36 = vmax.f32 %v2442_v32, 0.0 }
 0x1ae   :  { %v1592_v39 = vpack.c.bf16 %v1588_v34, %v1588_v34 }
 0x1af   :  { %v1593_v37 = vpack.c.bf16 %v1589_v36, %v1589_v36 }
 0x1b1   :  { %2421 = vmatprep.mubr.msk.bf16.mxu1 %vm1254_vm0, %v1593_v37 }
 0x1b2   :  { %1983 = vmatmul.mubr.bf16.vlgmr.msra.gmra.mrb[4].mxu1 %v1592_v39 }
 0x1b3   :  { %2111 = vmatpush1.bf16.msra.mxu1 %v2845_v38 }
 0x1b4   :  { %2112 = vmatprep.subr.bf16.mxu1 %v2882_v15 }
 0x1b7   :  { %2113 = vmatpush1.bf16.msra.mxu1 %v2846_v40 }
 0x1b8   :  { %2114 = vmatprep.subr.bf16.mxu1 %v2882_v15 }
 0x1bb   :  { %2115 = vmatpush1.bf16.msra.mxu1 %v2847_v41 }
 0x1bc   :  { %2116 = vmatprep.subr.bf16.mxu1 %v2882_v15 }
 0x1bf   :  { %2117 = vmatpush1.bf16.msra.mxu1 %v2848_v42 }
 0x1c0   :  { %2118 = vmatprep.subr.bf16.mxu1 %v2882_v15 }
 0x1c3   :  { %2119 = vmatpush1.bf16.msra.mxu1 %v2849_v43 }
 0x1c4   :  { %2120 = vmatprep.subr.bf16.mxu1 %v2882_v15 }
 0x1c7   :  { %2121 = vmatpush1.bf16.msra.mxu1 %v2850_v44 }
 0x1c8   :  { %2122 = vmatprep.subr.bf16.mxu1 %v2882_v15 }
 0x1cb   :  { %2123 = vmatpush1.bf16.msra.mxu1 %v2851_v45 }
 0x1cc   :  { %2124 = vmatprep.subr.bf16.mxu1 %v2882_v15 }
 0x1cf   :  { %2125 = vmatpush1.bf16.msra.mxu1 %v2852_v46 }
 0x1d0   :  { %2126 = vmatprep.subr.bf16.mxu1 %v2882_v15 }
 0x1d3   :  { %2127 = vmatpush1.bf16.msra.mxu1 %v2853_v47 }
 0x1d4   :  { %2128 = vmatprep.subr.bf16.mxu1 %v2882_v15 }
 0x1d7   :  { %2129 = vmatpush1.bf16.msra.mxu1 %v2854_v48 }
 0x1d8   :  { %2130 = vmatprep.subr.bf16.mxu1 %v2882_v15 }
 0x1db   :  { %2131 = vmatpush1.bf16.msra.mxu1 %v2855_v49 }
 0x1dc   :  { %2132 = vmatprep.subr.bf16.mxu1 %v2882_v15 }
 0x1df   :  { %2133 = vmatpush1.bf16.msra.mxu1 %v2856_v50 }
 0x1e0   :  { %2134 = vmatprep.subr.bf16.mxu1 %v2882_v15  ;;  %v1653_v15 = vrot.slane %v1644_v53, %v236_v8 }
 0x1e3   :  { %2135 = vmatpush1.bf16.msra.mxu1 %v2108_v52 }
 0x27d   :  { %v1943_v55 = vpop.f32.mrb[8].mxu0 }
 0x27e   :  { %v1944_v56 = vadd.f32 %v1943_v55, %v1649_v54  ;;  %v1945_v57 = vpop.f32.mrb[9].mxu0 }
 0x27f   :  { %v1947_v58 = vpop.f32.mrb[10].mxu0  ;;  %v1946_v60 = vadd.f32 %v1945_v57, %v1653_v15 }
 0x280   :  { %v1948_v59 = vpop.f32.mrb[11].mxu0 }
 0x285   :  { %v1984_v61 = vpop.f32.mrb[4].mxu1 }
 0x286   :  { %v1985_v62 = vadd.f32 %v1984_v61, %v1944_v56  ;;  %v1986_v63 = vpop.f32.mrb[5].mxu1 }
 0x287   :  { %v1987_v0 = vadd.f32 %v1986_v63, %v1946_v60  ;;  %v1988_v1 = vpop.f32.mrb[6].mxu1 }
 0x288   :  { %v1991_v2 = vmax.f32 %v1985_v62, 0.0  ;;  %v1989_v3 = vpop.f32.mrb[7].mxu1 }
 0x289   :  { %v1992_v4 = vmax.f32 %v1987_v0, 0.0 }
 0x28a   :  { %v1993_v7 = vpack.c.bf16 %v1991_v2, %v1991_v2 }
 0x28b   :  { %v1994_v6 = vpack.c.bf16 %v1992_v4, %v1992_v4 }
 0x28d   :  { %2436 = vmatprep.mubr.msk.bf16.mxu1 %vm2102_vm2, %v1994_v6 }
 0x28e   :  { %2143 = vmatmul.mubr.bf16.vlgmr.msra.gmra.mrb[8].mxu1 %v1993_v7 }
 0x361   :  { %v2144_v5 = vpop.f32.mrb[8].mxu1 }
 0x362   :  { %v2145_v8 = vadd.f32 %v2422_v9, %v2144_v5  ;;  %v2146_v10 = vpop.f32.mrb[9].mxu1 }
 0x363   :  { %v2147_v12 = vpop.f32.mrb[10].mxu1 }
 0x364   :  { %v2148_v13 = vpop.f32.mrb[11].mxu1  ;;  %2151 = vst.msk [vmem:[#allocation2] sm:$0xff] %vm2150_vm3, %v2145_v8 }
 0x365   :  { %2869 = shalt.err (!%p2866_p4)
}
 0x366   :  { %s2870_s6 = scalar_lea.hbm %s3785_s7, 128 }
 0x367   :  { %p2871_p5 = scmp.ne.s32.totalorder %s3785_s7, %s2870_s6  ;;  %p2874_p6 = scmp.lt.u32.totalorder %s2870_s6, %s3785_s7 }
 0x369   :  { %p2876_p7 = pnand %p2874_p6, %p2871_p5 }
 0x36b   :  { %2879 = shalt.err (!%p2876_p7)
}
 0x36c   :  { %2161 = dma.vmem_to_hbm [thread:$0]  %s2159_s12, 128, %s3785_s7, [#allocation3]  }
 0x36d   :  { %2880 = dma.done.wait [#allocation3], 128  }
 0x36e   :  { %2881 = vsyncadd [#allocation3], 4294967168 }
 0x36f   :  { %2165 = vsyncpa [#allocation3], 1 }

</bundles_post_ra>
